<compile_context>
chip_gen: v6e
topology: v6e:2x2x1
jax: 0.10.0
libtpu: 0.0.40
codegen_flags: <defaults>
</compile_context>

<pallas_src>
import jax
import jax.numpy as jnp
from jax.experimental import pallas as pl
from jax.experimental.pallas import tpu as pltpu

MOMENTUM = 0.01  # same default as the PyTorch module


def curricular_kernel(t_ref, cos_ref, pen_ref, out_ref):
    # t_ref: (1,) f32 scalar in SMEM (already-updated buffer value).
    t = t_ref[0]
    cos = cos_ref[...]              # (tile_b, tile_c) logits tile
    pen = pen_ref[...]              # (tile_b, 1) -> broadcasts over class dim
    # hard examples (cos > penalty):  cos * (t + cos); else pass-through.
    out_ref[...] = jnp.where(cos > pen, cos * (t + cos), cos).astype(out_ref.dtype)


def _pick_tile_c(C, tile_b, itemsize, target_bytes):
    """Class-tile width: big (byte-budget) and ideally an even divisor of C."""
    if C * tile_b * itemsize <= target_bytes:
        return C                                   # whole class dim in one block
    max_c = (target_bytes // (tile_b * itemsize)) // 128 * 128
    max_c = int(max(128, min(max_c, C)))
    start = (max_c // 128) * 128
    # Prefer a multiple-of-128 tile that divides C -> no ragged, masked last tile.
    for cand in range(start, 127, -128):
        if C % cand == 0:
            return cand
    return max_c                                   # ragged last tile (Pallas masks)


def curricular_margin(cosine_theta, cosine_theta_target, penalty_cosine_theta,
                      t, *, momentum=MOMENTUM, target_block_bytes=4 << 20,
                      in_place=False):
    """Returns (modified_cosine_theta, updated_t_buffer)."""
    B, C = cosine_theta.shape
    itemsize = jnp.dtype(cosine_theta.dtype).itemsize

    # --- buffer update (torch.no_grad() block), hoisted out of the kernel ---
    t_arr = jnp.asarray(t)
    t_old = jax.lax.stop_gradient(t_arr.astype(jnp.float32).reshape(-1)[0])
    tgt_mean = jnp.mean(
        jax.lax.stop_gradient(cosine_theta_target).astype(jnp.float32))
    t_new_f32 = ((1.0 - momentum) * tgt_mean + momentum * t_old).reshape((1,))
    t_new_f32 = t_new_f32.astype(jnp.float32)
    t_new_out = t_new_f32.astype(t_arr.dtype)      # preserve caller's buffer dtype

    # --- tile sizing: byte budget, (8,128)-legal, lane-dense output ---
    tile_b = B if B <= 128 else 128                # full dim or multiple of 8
    tile_c = _pick_tile_c(C, tile_b, itemsize, target_block_bytes)
    block_bytes = tile_b * tile_c * itemsize

    grid = (pl.cdiv(B, tile_b), pl.cdiv(C, tile_c))  # row axis slowest

    # 2 in + 2 out double buffers of the big block + penalty + slack.
    vmem_limit = int(min(48 << 20, max(24 << 20, 6 * block_bytes + (1 << 20))))

    kwargs = {}
    if in_place:
        # cosine_theta (input #1) reuses the output HBM buffer; caller must not
        # read the original logits afterwards (PyTorch mutates in place anyway).
        kwargs["input_output_aliases"] = {1: 0}

    out = pl.pallas_call(
        curricular_kernel,
        out_shape=jax.ShapeDtypeStruct((B, C), cosine_theta.dtype),
        grid=grid,
        in_specs=[
            # scalar t: scalar path, not a padded VMEM tile
            pl.BlockSpec(memory_space=pltpu.MemorySpace.SMEM),
            # streaming logits tile
            pl.BlockSpec((tile_b, tile_c), lambda i, j: (i, j)),
            # per-row penalty: only changes with the row tile (class axis fastest)
            pl.BlockSpec((tile_b, 1), lambda i, j: (i, 0)),
        ],
        out_specs=pl.BlockSpec((tile_b, tile_c), lambda i, j: (i, j)),
        compiler_params=pltpu.CompilerParams(
            dimension_semantics=("parallel", "parallel"),
            vmem_limit_bytes=vmem_limit),
        **kwargs,
    )(t_new_f32, cosine_theta, penalty_cosine_theta)

    return out, t_new_out


if __name__ == "__main__":
    key = jax.random.PRNGKey(0)
    B, C = 8, 256  # small batch x num-classes logit matrix
    k1, k2, k3 = jax.random.split(key, 3)

    cosine_theta = jax.random.uniform(k1, (B, C), jnp.float32, -1.0, 1.0)
    cosine_theta_target = jax.random.uniform(k2, (B, 1), jnp.float32, -1.0, 1.0)
    penalty_cosine_theta = jax.random.uniform(k3, (B, 1), jnp.float32, -1.0, 1.0)
    # register_buffer('t', torch.zeros(1)) -> deterministic zero init.
    t_buf = jnp.zeros((1,), jnp.float32)

    out, t_new = curricular_margin(
        cosine_theta, cosine_theta_target, penalty_cosine_theta, t_buf)
    jax.block_until_ready((out, t_new))

    # Pure-JAX reference for correctness (same momentum convention as PyTorch).
    t_expect = (1.0 - MOMENTUM) * jnp.mean(cosine_theta_target) + MOMENTUM * t_buf[0]
    mask = cosine_theta > penalty_cosine_theta
    ref = jnp.where(mask, cosine_theta * (t_expect + cosine_theta), cosine_theta)

    assert jnp.allclose(out, ref, atol=1e-6, rtol=1e-6), "output mismatch"
    assert jnp.allclose(t_new[0], t_expect, atol=1e-6, rtol=1e-6), "t buffer mismatch"
    print("KERNEL_OK")
</pallas_src>

<mosaic_0001>
module attributes {stable_mosaic.version = 11 : i64} {
  func.func @curricular_kernel(%arg0: i32, %arg1: i32, %arg2: memref<1xf32, #tpu.memory_space<smem>>, %arg3: memref<8x256xf32, #tpu.memory_space<vmem>>, %arg4: memref<8x1xf32, #tpu.memory_space<vmem>>, %arg5: memref<8x256xf32, #tpu.memory_space<vmem>>) attributes {dimension_semantics = [#tpu.dimension_semantics<parallel>, #tpu.dimension_semantics<parallel>], iteration_bounds = array<i64: 1, 1>, scalar_prefetch = 0 : i64, scratch_operands = 0 : i64, tpu.core_type = #tpu.core_type<tc>, window_params = [{transform_indices = @transform_0, window_bounds = array<i64: 1>}, {transform_indices = @transform_1, window_bounds = array<i64: 8, 256>}, {transform_indices = @transform_2, window_bounds = array<i64: 8, 1>}, {transform_indices = @transform_3, window_bounds = array<i64: 8, 256>}]} {
    %c0 = arith.constant 0 : index
    %0 = memref.load %arg2[%c0] : memref<1xf32, #tpu.memory_space<smem>>
    %c0_0 = arith.constant 0 : index
    %c0_1 = arith.constant 0 : index
    %1 = vector.load %arg3[%c0_0, %c0_1] : memref<8x256xf32, #tpu.memory_space<vmem>>, vector<8x256xf32>
    %c0_2 = arith.constant 0 : index
    %c0_3 = arith.constant 0 : index
    %2 = vector.load %arg4[%c0_2, %c0_3] : memref<8x1xf32, #tpu.memory_space<vmem>>, vector<8x1xf32>
    %3 = vector.broadcast %2 : vector<8x1xf32> to vector<8x256xf32>
    %4 = arith.cmpf ogt, %1, %3 : vector<8x256xf32>
    %5 = vector.broadcast %0 : f32 to vector<8x256xf32>
    %6 = arith.addf %5, %1 : vector<8x256xf32>
    %7 = arith.mulf %1, %6 : vector<8x256xf32>
    %8 = arith.select %4, %7, %1 : vector<8x256xi1>, vector<8x256xf32>
    %c0_4 = arith.constant 0 : index
    %c0_5 = arith.constant 0 : index
    %9 = vector.load %arg5[%c0_4, %c0_5] : memref<8x256xf32, #tpu.memory_space<vmem>>, vector<8x256xf32>
    tpu.vector_store %arg5[%c0_4, %c0_5], %8 {strides = array<i32>} : memref<8x256xf32, #tpu.memory_space<vmem>>, vector<8x256xf32>,
    return
  }
  func.func @transform_0(%arg0: i32, %arg1: i32) -> i32 {
    %c0_i32 = arith.constant 0 : i32
    %c0_i32_0 = arith.constant 0 : i32
    return %c0_i32 : i32
  }
  func.func @transform_1(%arg0: i32, %arg1: i32) -> (i32, i32) {
    %c0_i32 = arith.constant 0 : i32
    return %arg0, %arg1 : i32, i32
  }
  func.func @transform_2(%arg0: i32, %arg1: i32) -> (i32, i32) {
    %c0_i32 = arith.constant 0 : i32
    %c0_i32_0 = arith.constant 0 : i32
    return %arg0, %c0_i32 : i32, i32
  }
  func.func @transform_3(%arg0: i32, %arg1: i32) -> (i32, i32) {
    %c0_i32 = arith.constant 0 : i32
    return %arg0, %arg1 : i32, i32
  }
}

</mosaic_0001>

<bundles_post_ra>
// kernel: tpu_custom_call.1
= control target key start
LH: loop header
LB: loop body
LE: loop exit
PB: predicated region body
PF: predicated region fallthrough
CT: control target
= control target key end

     0   :  { %9 = vsyncpa [#allocation4], 0  ;;  %s146_s0 = inlined_call_operand.<no memory space> [shape: f32[1], index: 0, kind: input, shape index: {}]   ;;  %s147_s1 = inlined_call_operand.hbm [shape: f32[8,256], index: 1, kind: input, shape index: {}]   ;;  %s148_s2 = inlined_call_operand.vmem [shape: f32[8,1], index: 2, kind: input, shape index: {}]   ;;  %s149_s3 = inlined_call_operand.hbm [shape: f32[8,256], index: 3, kind: output, shape index: {}]  }
   0x1   :  { %10 = vsyncpa [#allocation5], 0  ;;  %s111_s12 = smov [#allocation3]  }
   0x2   :  { %s19_s13 = sshll.u32 %s111_s12, 4  ;;  %s20_s13 = int_to_ptr.vmem [resolvable:$true] %s19_s13 }
   0x3   :  { %s75_s14 = scalar_lea.vmem %s20_s13, 256  ;;  %p80_p1 = scmp.lt.s32.totalorder %s20_s13, %s20_s13 }
   0x4   :  { %p76_p0 = scmp.ne.s32.totalorder %s20_s13, %s75_s14  ;;  %p81_p2 = scmp.lt.s32.totalorder %s75_s14, %s75_s14 }
   0x6   :  { %p82_p3 = por %p81_p2, %p80_p1 }
   0x8   :  { %p83_p4 = pnand %p82_p3, %p76_p0 }
   0xa   :  { %86 = shalt.err (!%p83_p4)
}
   0xb   :  { %22 = dma.hbm_to_vmem [thread:$0]  %s147_s1, 256, %s20_s13, [#allocation4]  }
   0xc   :  { %107 = dma.done.wait [#allocation4], 256  }
   0xd   :  { %108 = vsyncadd [#allocation4], 4294967040  ;;  %v112_v0 = vmov 0   ;;  %v31_v1 = vld [vmem:[%s148_s2] sm:$0xff]  ;;  %v39_v2 = vstv %s146_s0  ;;  %v30_v4 = vld [vmem:[#allocation3 + $0x8] sm:$0xff]  ;;  %s113_s1 = smov [#allocation6]  }
   0xe   :  { %66 = vset.pattern.permute.xlu0 %v112_v0  ;;  %v29_v3 = vld [vmem:[#allocation3] sm:$0xff]  ;;  %v41_v6 = vadd.f32 %v39_v2, %v30_v4  ;;  %s54_s21 = sshll.u32 %s113_s1, 4  ;;  %s55_s21 = int_to_ptr.vmem [resolvable:$true] %s54_s21 }
   0xf   :  { %34 = vperm.xlu0 %66, %v31_v1   ;;  %v40_v5 = vadd.f32 %v39_v2, %v29_v3  ;;  %s87_s2 = scalar_lea.vmem %s55_s21, 256  ;;  %p92_p6 = scmp.lt.s32.totalorder %s55_s21, %s55_s21 }
  0x10   :  { %v43_v8 = vmul.f32 %v41_v6, %v30_v4  ;;  %p88_p5 = scmp.ne.s32.totalorder %s55_s21, %s87_s2  ;;  %p93_p7 = scmp.lt.s32.totalorder %s87_s2, %s87_s2 }
  0x11   :  { %v42_v7 = vmul.f32 %v40_v5, %v29_v3 }
  0x12   :  { %p94_p8 = por %p93_p7, %p92_p6 }
  0x14   :  { %p95_p9 = pnand %p94_p8, %p88_p5 }
  0x8a   :  { %v35_v9 = vpop.permute.xlu0 %34 }
  0x8b   :  { %vm37_vm0 = vcmp.gt.f32.partialorder %v29_v3, %v35_v9  ;;  %vm38_vm1 = vcmp.gt.f32.partialorder %v30_v4, %v35_v9 }
  0x8c   :  { %v44_v10 = vsel %vm37_vm0, %v42_v7, %v29_v3  ;;  %v45_v11 = vsel %vm38_vm1, %v43_v8, %v30_v4 }
  0x8d   :  { %46 = vst [vmem:[#allocation6] sm:$0xff] %v44_v10  ;;  %47 = vst [vmem:[#allocation6 + $0x8] sm:$0xff] %v45_v11 }
  0x8e   :  { %98 = shalt.err (!%p95_p9)
}
  0x8f   :  { %57 = dma.vmem_to_hbm [thread:$0]  %s55_s21, 256, %s149_s3, [#allocation5]  }
  0x90   :  { %109 = dma.done.wait [#allocation5], 256  }
  0x91   :  { %110 = vsyncadd [#allocation5], 4294967040 }
  0x92   :  { %61 = vsyncpa [#allocation4], 1 }
  0x93   :  { %62 = vsyncpa [#allocation5], 1 }

</bundles_post_ra>
